<compile_context>
chip_gen: v7x
topology: tpu7x:2x2x1
jax: 0.10.0
libtpu: 0.0.40
codegen_flags: <defaults>
</compile_context>

<pallas_src>
import functools
import math

import jax
import jax.numpy as jnp
from jax.experimental import pallas as pl
from jax.experimental.pallas import tpu as pltpu

_BN_EPS = 1e-5


# -----------------------------------------------------------------------------
# Fused kernel: whole CDCB forward for one batch element (VMEM resident)
# -----------------------------------------------------------------------------
def _cdcb_fused_kernel(x_ref, w0_ref, s0_ref, wcdc_ref, w1_ref, s1_ref,
                       cm_ref, band_ref, o_ref,
                       xs_ref, xps_ref, pad_ref, im_ref,
                       *, H, W, Cout, width, nums):
    """Layout: channels on sublanes, flattened H*W on lanes.

    x_ref   : (1, Cin, HW)            input image (flattened spatial)
    w0_ref  : (Cout, Cin)             1x1 conv weight, BN scale folded
    s0_ref  : (Cout, 1)               folded BN shift for the 1x1 conv
    wcdc_ref: (nums, width, 9*width)  CDC 3x3 weights, im2col layout
    w1_ref  : (Cout, 9*Cout)          conv1 3x3 weights (BN scale folded)
    s1_ref  : (Cout, 1)               folded BN shift for conv1
    cm_ref  : (2, HW)                 column validity masks (x>0, x<W-1)
    band_ref: (Cout, Cout)            ECA 3-tap conv1d as a band matrix
    o_ref   : (1, Cout, HW)           output
    scratch : xs (Cout,HW)  x = ReLU(conv1x1+BN)
              xps (Cout,HW) x_ = x + CDC(x)
              pad (Cout, HW+2W+2)     zero-ended staging row for shifted taps
              im  (9*Cout, HW)        im2col stack (one MXU matmul per conv)
    """
    HW = H * W
    P = W + 1                       # zero pad on each end of the flattened row
    f32 = jnp.float32

    # Zero only the two pad bands (tiny; done every step so it stays correct
    # when the "parallel" batch axis is split across TensorCores).
    pad_ref[:, 0:P] = jnp.zeros((Cout, P), f32)
    pad_ref[:, P + HW:] = jnp.zeros((Cout, P), f32)

    cm_neg = cm_ref[0:1, :]         # 0.0 where x == 0     (tap reads x-1)
    cm_pos = cm_ref[1:2, :]         # 0.0 where x == W-1   (tap reads x+1)

    def conv3x3(ci, w2d):
        # 3x3 / pad=1 conv of the activation staged in pad_ref rows [0, ci).
        # Each shifted tap is a contiguous lane slice of the zero-ended staging
        # row; the 9 planes are stacked in VMEM and contracted with ONE MXU
        # matmul (K = 9*ci, N = HW lane-dense).
        for t, (a, b) in enumerate(
                [(a, b) for a in (-1, 0, 1) for b in (-1, 0, 1)]):
            delta = a * W + b
            tap = pad_ref[0:ci, P + delta:P + delta + HW]
            if b == -1:
                tap = tap * cm_neg
            elif b == 1:
                tap = tap * cm_pos
            im_ref[t * ci:(t + 1) * ci, :] = tap
        return jnp.dot(w2d, im_ref[0:9 * ci, :], preferred_element_type=f32)

    # ---- x = ReLU(conv1x1(input) + folded BN shift) -------------------------
    xs_ref[...] = jnp.maximum(
        jnp.dot(w0_ref[...], x_ref[0], preferred_element_type=f32)
        + s0_ref[...], 0.0)

    # ---- x_ = x + CDC(x)  (cascade over channel chunks, carried in VMEM) ----
    # TODO(synk): DeformConv2d's learned offsets are assumed zero-initialized
    # (deform-conv-v2 init), so each deformable conv is a plain 3x3/pad=1 conv.
    sp = None
    for i in range(nums):
        chunk = xs_ref[i * width:(i + 1) * width, :]
        sp = chunk if i == 0 else sp + chunk
        pad_ref[0:width, P:P + HW] = sp
        conv = conv3x3(width, wcdc_ref[i])
        xps_ref[i * width:(i + 1) * width, :] = chunk + conv   # x + CDC(x) chunk
        sp = conv                                              # carried forward
    if Cout - nums * width > 0:                   # passthrough split: x + x
        xps_ref[nums * width:, :] = 2.0 * xs_ref[nums * width:, :]

    # ---- out = x + ReLU(conv3x3(x_) + folded BN shift) ----------------------
    pad_ref[:, P:P + HW] = xps_ref[...]
    y = jnp.maximum(conv3x3(Cout, w1_ref[...]) + s1_ref[...], 0.0)
    out = xs_ref[...] + y

    # ---- ECA: global avg pool -> 3-tap channel conv (band) -> sigmoid gate --
    pooled = jnp.mean(out, axis=1, keepdims=True)              # (Cout, 1)
    gate = jax.nn.sigmoid(
        jnp.dot(band_ref[...], pooled, preferred_element_type=f32))
    o_ref[0] = (out * gate).astype(o_ref.dtype)


# -----------------------------------------------------------------------------
# Wrapper: weight folding / layout prep in plain JAX, compute in one pallas_call
# -----------------------------------------------------------------------------
def _fold_bn(conv_bias, gamma, beta, mean, var):
    """Fold eval-mode BatchNorm2d (+ conv bias) into per-channel scale/shift."""
    scale = gamma / jnp.sqrt(var + _BN_EPS)                 # folded into weights
    shift = beta - mean * scale + conv_bias * scale         # kernel epilogue
    return scale.astype(jnp.float32), shift.reshape(-1, 1).astype(jnp.float32)


def _im2col_weight(w, scale=None):
    """(Cout, Cin, 3, 3) -> (Cout, 9*Cin); column index = (dy*3+dx)*Cin + cin."""
    cout, cin = w.shape[0], w.shape[1]
    if scale is not None:
        w = w * scale[:, None, None, None]
    return jnp.transpose(w, (0, 2, 3, 1)).reshape(cout, 9 * cin).astype(jnp.float32)


def cdcb_forward(x_nchw, p):
    B, Cin, H, W = x_nchw.shape
    HW = H * W
    width, nums = p["width"], p["nums"]
    Cout = p["conv0_w"].shape[0]

    # NCHW already has spatial last -> flattening is a free reshape.
    x_flat = x_nchw.reshape(B, Cin, HW).astype(jnp.float32)

    # self.conv : Conv2d(in,out,1) + BN + ReLU  (BN scale folded into W)
    s0, sh0 = _fold_bn(p["conv0_b"], *p["bn0"])
    w0 = (p["conv0_w"][:, :, 0, 0] * s0[:, None]).astype(jnp.float32)  # (Cout, Cin)

    # CDC deformable-as-plain 3x3 convs, im2col weight layout.
    wcdc = jnp.stack([_im2col_weight(w) for w in p["cdc_ws"]], axis=0)

    # self.conv1 : Conv2d(out,out,3,pad=1) + BN + ReLU  (BN scale folded)
    s1, sh1 = _fold_bn(p["conv1_b"], *p["bn1"])
    w1 = _im2col_weight(p["conv1_w"], s1)                              # (Cout, 9*Cout)

    # Column validity masks for the x-1 / x+1 taps of the flattened layout.
    col = jnp.arange(HW, dtype=jnp.int32) % W
    cmask = jnp.stack([(col != 0), (col != W - 1)]).astype(jnp.float32)  # (2, HW)

    # ECA conv1d(k=3,pad=1) as a precomputed band matrix (built once, tiny).
    ew = p["eca_w"].astype(jnp.float32)
    band = (jnp.eye(Cout, k=-1, dtype=jnp.float32) * ew[0]
            + jnp.eye(Cout, dtype=jnp.float32) * ew[1]
            + jnp.eye(Cout, k=1, dtype=jnp.float32) * ew[2])

    kernel = functools.partial(_cdcb_fused_kernel, H=H, W=W, Cout=Cout,
                               width=width, nums=nums)

    # TODO(synk): for large images, tile HW into lane-aligned strips with a
    # one-row halo (strip size from pltpu.get_tpu_info VMEM) instead of keeping
    # the whole image per grid step.
    out_flat = pl.pallas_call(
        kernel,
        out_shape=jax.ShapeDtypeStruct((B, Cout, HW), jnp.float32),
        grid=(B,),
        in_specs=[
            pl.BlockSpec((1, Cin, HW), lambda b: (b, 0, 0)),
            pl.BlockSpec((Cout, Cin), lambda b: (0, 0)),
            pl.BlockSpec((Cout, 1), lambda b: (0, 0)),
            pl.BlockSpec((nums, width, 9 * width), lambda b: (0, 0, 0)),
            pl.BlockSpec((Cout, 9 * Cout), lambda b: (0, 0)),
            pl.BlockSpec((Cout, 1), lambda b: (0, 0)),
            pl.BlockSpec((2, HW), lambda b: (0, 0)),
            pl.BlockSpec((Cout, Cout), lambda b: (0, 0)),
        ],
        out_specs=pl.BlockSpec((1, Cout, HW), lambda b: (b, 0, 0)),
        scratch_shapes=[
            pltpu.VMEM((Cout, HW), jnp.float32),              # x
            pltpu.VMEM((Cout, HW), jnp.float32),              # x_ = x + CDC(x)
            pltpu.VMEM((Cout, HW + 2 * W + 2), jnp.float32),  # zero-ended staging
            pltpu.VMEM((9 * Cout, HW), jnp.float32),          # im2col stack
        ],
        compiler_params=pltpu.CompilerParams(
            dimension_semantics=("parallel",),
            vmem_limit_bytes=32 * 1024 * 1024),
    )(x_flat, w0, sh0, wcdc, w1, sh1, cmask, band)

    return out_flat.reshape(B, Cout, H, W)                   # NCHW, no transposes


# -----------------------------------------------------------------------------
# Deterministic parameter initialization (synthetic, matches module shapes)
# -----------------------------------------------------------------------------
def init_params(key, in_ch, out_ch, scales):
    width = max(int(math.ceil(out_ch / scales)), int(math.floor(out_ch // scales)))
    nums = 1 if scales == 1 else scales - 1
    keys = jax.random.split(key, 16 + nums)
    f32 = jnp.float32

    def bn_params(k):
        k1, k2, k3, k4 = jax.random.split(k, 4)
        gamma = 1.0 + 0.1 * jax.random.normal(k1, (out_ch,), f32)
        beta = 0.1 * jax.random.normal(k2, (out_ch,), f32)
        mean = 0.05 * jax.random.normal(k3, (out_ch,), f32)
        var = 1.0 + 0.1 * jnp.abs(jax.random.normal(k4, (out_ch,), f32))
        return (gamma, beta, mean, var)

    p = {
        "width": width,
        "nums": nums,
        # nn.Conv2d(in_ch, out_ch, 1)
        "conv0_w": 0.2 * jax.random.normal(keys[0], (out_ch, in_ch, 1, 1), f32),
        "conv0_b": 0.1 * jax.random.normal(keys[1], (out_ch,), f32),
        "bn0": bn_params(keys[2]),
        # nn.Conv2d(out_ch, out_ch, 3, padding=1)
        "conv1_w": 0.1 * jax.random.normal(keys[3], (out_ch, out_ch, 3, 3), f32),
        "conv1_b": 0.1 * jax.random.normal(keys[4], (out_ch,), f32),
        "bn1": bn_params(keys[5]),
        # eca_layer: Conv1d(1, 1, k=3, pad=1, bias=False)
        "eca_w": 0.5 * jax.random.normal(keys[6], (3,), f32),
        # CDC deformable 3x3 convs (width -> width), no bias
        "cdc_ws": [0.1 * jax.random.normal(keys[8 + i], (width, width, 3, 3), f32)
                   for i in range(nums)],
    }
    return p


if __name__ == "__main__":
    B, in_ch, out_ch, H, W, scales = 2, 4, 8, 16, 16, 2
    key = jax.random.PRNGKey(0)
    kx, kp = jax.random.split(key)
    x = jax.random.normal(kx, (B, in_ch, H, W), jnp.float32)   # NCHW like PyTorch
    params = init_params(kp, in_ch, out_ch, scales)

    y = cdcb_forward(x, params)
    jax.block_until_ready(y)
    assert y.shape == (B, out_ch, H, W), y.shape
    assert jnp.all(jnp.isfinite(y))
    print("KERNEL_OK")
</pallas_src>

<mosaic_0001>
module attributes {stable_mosaic.version = 11 : i64} {
  func.func @_cdcb_fused_kernel(%arg0: i32, %arg1: memref<1x4x256xf32, #tpu.memory_space<vmem>>, %arg2: memref<8x4xf32, #tpu.memory_space<vmem>>, %arg3: memref<8x1xf32, #tpu.memory_space<vmem>>, %arg4: memref<1x4x36xf32, #tpu.memory_space<vmem>>, %arg5: memref<8x72xf32, #tpu.memory_space<vmem>>, %arg6: memref<8x1xf32, #tpu.memory_space<vmem>>, %arg7: memref<2x256xf32, #tpu.memory_space<vmem>>, %arg8: memref<8x8xf32, #tpu.memory_space<vmem>>, %arg9: memref<1x8x256xf32, #tpu.memory_space<vmem>>, %arg10: memref<8x256xf32, #tpu.memory_space<vmem>>, %arg11: memref<8x256xf32, #tpu.memory_space<vmem>>, %arg12: memref<8x290xf32, #tpu.memory_space<vmem>>, %arg13: memref<72x256xf32, #tpu.memory_space<vmem>>) attributes {dimension_semantics = [#tpu.dimension_semantics<parallel>], iteration_bounds = array<i64: 2>, scalar_prefetch = 0 : i64, scratch_operands = 4 : i64, tpu.core_type = #tpu.core_type<tc>, window_params = [{transform_indices = @transform_0, window_bounds = array<i64: 1, 4, 256>}, {pipeline_mode = #tpu.pipeline_mode<synchronous>, transform_indices = @transform_1, window_bounds = array<i64: 8, 4>}, {pipeline_mode = #tpu.pipeline_mode<synchronous>, transform_indices = @transform_2, window_bounds = array<i64: 8, 1>}, {pipeline_mode = #tpu.pipeline_mode<synchronous>, transform_indices = @transform_3, window_bounds = array<i64: 1, 4, 36>}, {pipeline_mode = #tpu.pipeline_mode<synchronous>, transform_indices = @transform_4, window_bounds = array<i64: 8, 72>}, {pipeline_mode = #tpu.pipeline_mode<synchronous>, transform_indices = @transform_5, window_bounds = array<i64: 8, 1>}, {pipeline_mode = #tpu.pipeline_mode<synchronous>, transform_indices = @transform_6, window_bounds = array<i64: 2, 256>}, {pipeline_mode = #tpu.pipeline_mode<synchronous>, transform_indices = @transform_7, window_bounds = array<i64: 8, 8>}, {transform_indices = @transform_8, window_bounds = array<i64: 1, 8, 256>}]} {
    %cst = arith.constant 0.000000e+00 : f32
    %0 = vector.broadcast %cst : f32 to vector<8x17xf32>
    %c0 = arith.constant 0 : index
    %c0_0 = arith.constant 0 : index
    %1 = vector.load %arg12[%c0, %c0_0] : memref<8x290xf32, #tpu.memory_space<vmem>>, vector<8x17xf32>
    tpu.vector_store %arg12[%c0, %c0_0], %0 {strides = array<i32>} : memref<8x290xf32, #tpu.memory_space<vmem>>, vector<8x17xf32>,
    %cst_1 = arith.constant 0.000000e+00 : f32
    %2 = vector.broadcast %cst_1 : f32 to vector<8x17xf32>
    %c0_2 = arith.constant 0 : index
    %c273 = arith.constant 273 : index
    %3 = vector.load %arg12[%c0_2, %c273] : memref<8x290xf32, #tpu.memory_space<vmem>>, vector<8x17xf32>
    tpu.vector_store %arg12[%c0_2, %c273], %2 {strides = array<i32>} : memref<8x290xf32, #tpu.memory_space<vmem>>, vector<8x17xf32>,
    %c0_3 = arith.constant 0 : index
    %c0_4 = arith.constant 0 : index
    %4 = vector.load %arg7[%c0_3, %c0_4] : memref<2x256xf32, #tpu.memory_space<vmem>>, vector<1x256xf32>
    %c1 = arith.constant 1 : index
    %c0_5 = arith.constant 0 : index
    %5 = vector.load %arg7[%c1, %c0_5] : memref<2x256xf32, #tpu.memory_space<vmem>>, vector<1x256xf32>
    %c0_6 = arith.constant 0 : index
    %c0_7 = arith.constant 0 : index
    %6 = vector.load %arg2[%c0_6, %c0_7] : memref<8x4xf32, #tpu.memory_space<vmem>>, vector<8x4xf32>
    %c0_8 = arith.constant 0 : index
    %c0_9 = arith.constant 0 : index
    %c0_10 = arith.constant 0 : index
    %7 = vector.load %arg1[%c0_8, %c0_9, %c0_10] : memref<1x4x256xf32, #tpu.memory_space<vmem>>, vector<1x4x256xf32>
    %8 = vector.shape_cast %7 : vector<1x4x256xf32> to vector<4x256xf32>
    %cst_11 = arith.constant dense<0.000000e+00> : vector<8x256xf32>
    %9 = tpu.matmul %6, %8, %cst_11 {dimension_numbers = #tpu.dot_dimension_numbers<[1], [0], [0], [1], [0, 0, 1, 1], [], []>} : vector<8x4xf32>, vector<4x256xf32>, vector<8x256xf32> -> vector<8x256xf32>
    %c0_12 = arith.constant 0 : index
    %c0_13 = arith.constant 0 : index
    %10 = vector.load %arg3[%c0_12, %c0_13] : memref<8x1xf32, #tpu.memory_space<vmem>>, vector<8x1xf32>
    %11 = vector.broadcast %10 : vector<8x1xf32> to vector<8x256xf32>
    %12 = arith.addf %9, %11 : vector<8x256xf32>
    %cst_14 = arith.constant 0.000000e+00 : f32
    %13 = vector.broadcast %cst_14 : f32 to vector<8x256xf32>
    %14 = arith.maximumf %12, %13 : vector<8x256xf32>
    %c0_15 = arith.constant 0 : index
    %c0_16 = arith.constant 0 : index
    %15 = vector.load %arg10[%c0_15, %c0_16] : memref<8x256xf32, #tpu.memory_space<vmem>>, vector<8x256xf32>
    tpu.vector_store %arg10[%c0_15, %c0_16], %14 {strides = array<i32>} : memref<8x256xf32, #tpu.memory_space<vmem>>, vector<8x256xf32>,
    %c0_17 = arith.constant 0 : index
    %c0_18 = arith.constant 0 : index
    %16 = vector.load %arg10[%c0_17, %c0_18] : memref<8x256xf32, #tpu.memory_space<vmem>>, vector<4x256xf32>
    %c0_19 = arith.constant 0 : index
    %c17 = arith.constant 17 : index
    %17 = vector.load %arg12[%c0_19, %c17] : memref<8x290xf32, #tpu.memory_space<vmem>>, vector<4x256xf32>
    tpu.vector_store %arg12[%c0_19, %c17], %16 {strides = array<i32>} : memref<8x290xf32, #tpu.memory_space<vmem>>, vector<4x256xf32>,
    %c0_20 = arith.constant 0 : index
    %c0_21 = arith.constant 0 : index
    %c0_22 = arith.constant 0 : index
    %18 = vector.load %arg4[%c0_20, %c0_21, %c0_22] : memref<1x4x36xf32, #tpu.memory_space<vmem>>, vector<1x4x36xf32>
    %19 = vector.shape_cast %18 : vector<1x4x36xf32> to vector<4x36xf32>
    %c0_23 = arith.constant 0 : index
    %c0_24 = arith.constant 0 : index
    %20 = vector.load %arg12[%c0_23, %c0_24] : memref<8x290xf32, #tpu.memory_space<vmem>>, vector<4x256xf32>
    %21 = vector.broadcast %4 : vector<1x256xf32> to vector<4x256xf32>
    %22 = arith.mulf %20, %21 : vector<4x256xf32>
    %c0_25 = arith.constant 0 : index
    %c0_26 = arith.constant 0 : index
    %23 = vector.load %arg13[%c0_25, %c0_26] : memref<72x256xf32, #tpu.memory_space<vmem>>, vector<4x256xf32>
    tpu.vector_store %arg13[%c0_25, %c0_26], %22 {strides = array<i32>} : memref<72x256xf32, #tpu.memory_space<vmem>>, vector<4x256xf32>,
    %c0_27 = arith.constant 0 : index
    %c1_28 = arith.constant 1 : index
    %24 = vector.load %arg12[%c0_27, %c1_28] : memref<8x290xf32, #tpu.memory_space<vmem>>, vector<4x256xf32>
    %c4 = arith.constant 4 : index
    %c0_29 = arith.constant 0 : index
    %25 = vector.load %arg13[%c4, %c0_29] : memref<72x256xf32, #tpu.memory_space<vmem>>, vector<4x256xf32>
    tpu.vector_store %arg13[%c4, %c0_29], %24 {strides = array<i32>} : memref<72x256xf32, #tpu.memory_space<vmem>>, vector<4x256xf32>,
    %c0_30 = arith.constant 0 : index
    %c2 = arith.constant 2 : index
    %26 = vector.load %arg12[%c0_30, %c2] : memref<8x290xf32, #tpu.memory_space<vmem>>, vector<4x256xf32>
    %27 = vector.broadcast %5 : vector<1x256xf32> to vector<4x256xf32>
    %28 = arith.mulf %26, %27 : vector<4x256xf32>
    %c8 = arith.constant 8 : index
    %c0_31 = arith.constant 0 : index
    %29 = vector.load %arg13[%c8, %c0_31] : memref<72x256xf32, #tpu.memory_space<vmem>>, vector<4x256xf32>
    tpu.vector_store %arg13[%c8, %c0_31], %28 {strides = array<i32>} : memref<72x256xf32, #tpu.memory_space<vmem>>, vector<4x256xf32>,
    %c0_32 = arith.constant 0 : index
    %c16 = arith.constant 16 : index
    %30 = vector.load %arg12[%c0_32, %c16] : memref<8x290xf32, #tpu.memory_space<vmem>>, vector<4x256xf32>
    %31 = vector.broadcast %4 : vector<1x256xf32> to vector<4x256xf32>
    %32 = arith.mulf %30, %31 : vector<4x256xf32>
    %c12 = arith.constant 12 : index
    %c0_33 = arith.constant 0 : index
    %33 = vector.load %arg13[%c12, %c0_33] : memref<72x256xf32, #tpu.memory_space<vmem>>, vector<4x256xf32>
    tpu.vector_store %arg13[%c12, %c0_33], %32 {strides = array<i32>} : memref<72x256xf32, #tpu.memory_space<vmem>>, vector<4x256xf32>,
    %c0_34 = arith.constant 0 : index
    %c17_35 = arith.constant 17 : index
    %34 = vector.load %arg12[%c0_34, %c17_35] : memref<8x290xf32, #tpu.memory_space<vmem>>, vector<4x256xf32>
    %c16_36 = arith.constant 16 : index
    %c0_37 = arith.constant 0 : index
    %35 = vector.load %arg13[%c16_36, %c0_37] : memref<72x256xf32, #tpu.memory_space<vmem>>, vector<4x256xf32>
    tpu.vector_store %arg13[%c16_36, %c0_37], %34 {strides = array<i32>} : memref<72x256xf32, #tpu.memory_space<vmem>>, vector<4x256xf32>,
    %c0_38 = arith.constant 0 : index
    %c18 = arith.constant 18 : index
    %36 = vector.load %arg12[%c0_38, %c18] : memref<8x290xf32, #tpu.memory_space<vmem>>, vector<4x256xf32>
    %37 = vector.broadcast %5 : vector<1x256xf32> to vector<4x256xf32>
    %38 = arith.mulf %36, %37 : vector<4x256xf32>
    %c20 = arith.constant 20 : index
    %c0_39 = arith.constant 0 : index
    %39 = vector.load %arg13[%c20, %c0_39] : memref<72x256xf32, #tpu.memory_space<vmem>>, vector<4x256xf32>
    tpu.vector_store %arg13[%c20, %c0_39], %38 {strides = array<i32>} : memref<72x256xf32, #tpu.memory_space<vmem>>, vector<4x256xf32>,
    %c0_40 = arith.constant 0 : index
    %c32 = arith.constant 32 : index
    %40 = vector.load %arg12[%c0_40, %c32] : memref<8x290xf32, #tpu.memory_space<vmem>>, vector<4x256xf32>
    %41 = vector.broadcast %4 : vector<1x256xf32> to vector<4x256xf32>
    %42 = arith.mulf %40, %41 : vector<4x256xf32>
    %c24 = arith.constant 24 : index
    %c0_41 = arith.constant 0 : index
    %43 = vector.load %arg13[%c24, %c0_41] : memref<72x256xf32, #tpu.memory_space<vmem>>, vector<4x256xf32>
    tpu.vector_store %arg13[%c24, %c0_41], %42 {strides = array<i32>} : memref<72x256xf32, #tpu.memory_space<vmem>>, vector<4x256xf32>,
    %c0_42 = arith.constant 0 : index
    %c33 = arith.constant 33 : index
    %44 = vector.load %arg12[%c0_42, %c33] : memref<8x290xf32, #tpu.memory_space<vmem>>, vector<4x256xf32>
    %c28 = arith.constant 28 : index
    %c0_43 = arith.constant 0 : index
    %45 = vector.load %arg13[%c28, %c0_43] : memref<72x256xf32, #tpu.memory_space<vmem>>, vector<4x256xf32>
    tpu.vector_store %arg13[%c28, %c0_43], %44 {strides = array<i32>} : memref<72x256xf32, #tpu.memory_space<vmem>>, vector<4x256xf32>,
    %c0_44 = arith.constant 0 : index
    %c34 = arith.constant 34 : index
    %46 = vector.load %arg12[%c0_44, %c34] : memref<8x290xf32, #tpu.memory_space<vmem>>, vector<4x256xf32>
    %47 = vector.broadcast %5 : vector<1x256xf32> to vector<4x256xf32>
    %48 = arith.mulf %46, %47 : vector<4x256xf32>
    %c32_45 = arith.constant 32 : index
    %c0_46 = arith.constant 0 : index
    %49 = vector.load %arg13[%c32_45, %c0_46] : memref<72x256xf32, #tpu.memory_space<vmem>>, vector<4x256xf32>
    tpu.vector_store %arg13[%c32_45, %c0_46], %48 {strides = array<i32>} : memref<72x256xf32, #tpu.memory_space<vmem>>, vector<4x256xf32>,
    %c0_47 = arith.constant 0 : index
    %c0_48 = arith.constant 0 : index
    %50 = vector.load %arg13[%c0_47, %c0_48] : memref<72x256xf32, #tpu.memory_space<vmem>>, vector<36x256xf32>
    %cst_49 = arith.constant dense<0.000000e+00> : vector<4x256xf32>
    %51 = tpu.matmul %19, %50, %cst_49 {dimension_numbers = #tpu.dot_dimension_numbers<[1], [0], [0], [1], [0, 0, 1, 1], [], []>} : vector<4x36xf32>, vector<36x256xf32>, vector<4x256xf32> -> vector<4x256xf32>
    %52 = arith.addf %16, %51 : vector<4x256xf32>
    %c0_50 = arith.constant 0 : index
    %c0_51 = arith.constant 0 : index
    %53 = vector.load %arg11[%c0_50, %c0_51] : memref<8x256xf32, #tpu.memory_space<vmem>>, vector<4x256xf32>
    tpu.vector_store %arg11[%c0_50, %c0_51], %52 {strides = array<i32>} : memref<8x256xf32, #tpu.memory_space<vmem>>, vector<4x256xf32>,
    %c4_52 = arith.constant 4 : index
    %c0_53 = arith.constant 0 : index
    %54 = vector.load %arg10[%c4_52, %c0_53] : memref<8x256xf32, #tpu.memory_space<vmem>>, vector<4x256xf32>
    %cst_54 = arith.constant 2.000000e+00 : f32
    %55 = vector.broadcast %cst_54 : f32 to vector<4x256xf32>
    %56 = arith.mulf %55, %54 : vector<4x256xf32>
    %c4_55 = arith.constant 4 : index
    %c0_56 = arith.constant 0 : index
    %57 = vector.load %arg11[%c4_55, %c0_56] : memref<8x256xf32, #tpu.memory_space<vmem>>, vector<4x256xf32>
    tpu.vector_store %arg11[%c4_55, %c0_56], %56 {strides = array<i32>} : memref<8x256xf32, #tpu.memory_space<vmem>>, vector<4x256xf32>,
    %c0_57 = arith.constant 0 : index
    %c0_58 = arith.constant 0 : index
    %58 = vector.load %arg11[%c0_57, %c0_58] : memref<8x256xf32, #tpu.memory_space<vmem>>, vector<8x256xf32>
    %c0_59 = arith.constant 0 : index
    %c17_60 = arith.constant 17 : index
    %59 = vector.load %arg12[%c0_59, %c17_60] : memref<8x290xf32, #tpu.memory_space<vmem>>, vector<8x256xf32>
    tpu.vector_store %arg12[%c0_59, %c17_60], %58 {strides = array<i32>} : memref<8x290xf32, #tpu.memory_space<vmem>>, vector<8x256xf32>,
    %c0_61 = arith.constant 0 : index
    %c0_62 = arith.constant 0 : index
    %60 = vector.load %arg5[%c0_61, %c0_62] : memref<8x72xf32, #tpu.memory_space<vmem>>, vector<8x72xf32>
    %c0_63 = arith.constant 0 : index
    %c0_64 = arith.constant 0 : index
    %61 = vector.load %arg12[%c0_63, %c0_64] : memref<8x290xf32, #tpu.memory_space<vmem>>, vector<8x256xf32>
    %62 = vector.broadcast %4 : vector<1x256xf32> to vector<8x256xf32>
    %63 = arith.mulf %61, %62 : vector<8x256xf32>
    %c0_65 = arith.constant 0 : index
    %c0_66 = arith.constant 0 : index
    %64 = vector.load %arg13[%c0_65, %c0_66] : memref<72x256xf32, #tpu.memory_space<vmem>>, vector<8x256xf32>
    tpu.vector_store %arg13[%c0_65, %c0_66], %63 {strides = array<i32>} : memref<72x256xf32, #tpu.memory_space<vmem>>, vector<8x256xf32>,
    %c0_67 = arith.constant 0 : index
    %c1_68 = arith.constant 1 : index
    %65 = vector.load %arg12[%c0_67, %c1_68] : memref<8x290xf32, #tpu.memory_space<vmem>>, vector<8x256xf32>
    %c8_69 = arith.constant 8 : index
    %c0_70 = arith.constant 0 : index
    %66 = vector.load %arg13[%c8_69, %c0_70] : memref<72x256xf32, #tpu.memory_space<vmem>>, vector<8x256xf32>
    tpu.vector_store %arg13[%c8_69, %c0_70], %65 {strides = array<i32>} : memref<72x256xf32, #tpu.memory_space<vmem>>, vector<8x256xf32>,
    %c0_71 = arith.constant 0 : index
    %c2_72 = arith.constant 2 : index
    %67 = vector.load %arg12[%c0_71, %c2_72] : memref<8x290xf32, #tpu.memory_space<vmem>>, vector<8x256xf32>
    %68 = vector.broadcast %5 : vector<1x256xf32> to vector<8x256xf32>
    %69 = arith.mulf %67, %68 : vector<8x256xf32>
    %c16_73 = arith.constant 16 : index
    %c0_74 = arith.constant 0 : index
    %70 = vector.load %arg13[%c16_73, %c0_74] : memref<72x256xf32, #tpu.memory_space<vmem>>, vector<8x256xf32>
    tpu.vector_store %arg13[%c16_73, %c0_74], %69 {strides = array<i32>} : memref<72x256xf32, #tpu.memory_space<vmem>>, vector<8x256xf32>,
    %c0_75 = arith.constant 0 : index
    %c16_76 = arith.constant 16 : index
    %71 = vector.load %arg12[%c0_75, %c16_76] : memref<8x290xf32, #tpu.memory_space<vmem>>, vector<8x256xf32>
    %72 = vector.broadcast %4 : vector<1x256xf32> to vector<8x256xf32>
    %73 = arith.mulf %71, %72 : vector<8x256xf32>
    %c24_77 = arith.constant 24 : index
    %c0_78 = arith.constant 0 : index
    %74 = vector.load %arg13[%c24_77, %c0_78] : memref<72x256xf32, #tpu.memory_space<vmem>>, vector<8x256xf32>
    tpu.vector_store %arg13[%c24_77, %c0_78], %73 {strides = array<i32>} : memref<72x256xf32, #tpu.memory_space<vmem>>, vector<8x256xf32>,
    %c0_79 = arith.constant 0 : index
    %c17_80 = arith.constant 17 : index
    %75 = vector.load %arg12[%c0_79, %c17_80] : memref<8x290xf32, #tpu.memory_space<vmem>>, vector<8x256xf32>
    %c32_81 = arith.constant 32 : index
    %c0_82 = arith.constant 0 : index
    %76 = vector.load %arg13[%c32_81, %c0_82] : memref<72x256xf32, #tpu.memory_space<vmem>>, vector<8x256xf32>
    tpu.vector_store %arg13[%c32_81, %c0_82], %75 {strides = array<i32>} : memref<72x256xf32, #tpu.memory_space<vmem>>, vector<8x256xf32>,
    %c0_83 = arith.constant 0 : index
    %c18_84 = arith.constant 18 : index
    %77 = vector.load %arg12[%c0_83, %c18_84] : memref<8x290xf32, #tpu.memory_space<vmem>>, vector<8x256xf32>
    %78 = vector.broadcast %5 : vector<1x256xf32> to vector<8x256xf32>
    %79 = arith.mulf %77, %78 : vector<8x256xf32>
    %c40 = arith.constant 40 : index
    %c0_85 = arith.constant 0 : index
    %80 = vector.load %arg13[%c40, %c0_85] : memref<72x256xf32, #tpu.memory_space<vmem>>, vector<8x256xf32>
    tpu.vector_store %arg13[%c40, %c0_85], %79 {strides = array<i32>} : memref<72x256xf32, #tpu.memory_space<vmem>>, vector<8x256xf32>,
    %c0_86 = arith.constant 0 : index
    %c32_87 = arith.constant 32 : index
    %81 = vector.load %arg12[%c0_86, %c32_87] : memref<8x290xf32, #tpu.memory_space<vmem>>, vector<8x256xf32>
    %82 = vector.broadcast %4 : vector<1x256xf32> to vector<8x256xf32>
    %83 = arith.mulf %81, %82 : vector<8x256xf32>
    %c48 = arith.constant 48 : index
    %c0_88 = arith.constant 0 : index
    %84 = vector.load %arg13[%c48, %c0_88] : memref<72x256xf32, #tpu.memory_space<vmem>>, vector<8x256xf32>
    tpu.vector_store %arg13[%c48, %c0_88], %83 {strides = array<i32>} : memref<72x256xf32, #tpu.memory_space<vmem>>, vector<8x256xf32>,
    %c0_89 = arith.constant 0 : index
    %c33_90 = arith.constant 33 : index
    %85 = vector.load %arg12[%c0_89, %c33_90] : memref<8x290xf32, #tpu.memory_space<vmem>>, vector<8x256xf32>
    %c56 = arith.constant 56 : index
    %c0_91 = arith.constant 0 : index
    %86 = vector.load %arg13[%c56, %c0_91] : memref<72x256xf32, #tpu.memory_space<vmem>>, vector<8x256xf32>
    tpu.vector_store %arg13[%c56, %c0_91], %85 {strides = array<i32>} : memref<72x256xf32, #tpu.memory_space<vmem>>, vector<8x256xf32>,
    %c0_92 = arith.constant 0 : index
    %c34_93 = arith.constant 34 : index
    %87 = vector.load %arg12[%c0_92, %c34_93] : memref<8x290xf32, #tpu.memory_space<vmem>>, vector<8x256xf32>
    %88 = vector.broadcast %5 : vector<1x256xf32> to vector<8x256xf32>
    %89 = arith.mulf %87, %88 : vector<8x256xf32>
    %c64 = arith.constant 64 : index
    %c0_94 = arith.constant 0 : index
    %90 = vector.load %arg13[%c64, %c0_94] : memref<72x256xf32, #tpu.memory_space<vmem>>, vector<8x256xf32>
    tpu.vector_store %arg13[%c64, %c0_94], %89 {strides = array<i32>} : memref<72x256xf32, #tpu.memory_space<vmem>>, vector<8x256xf32>,
    %c0_95 = arith.constant 0 : index
    %c0_96 = arith.constant 0 : index
    %91 = vector.load %arg13[%c0_95, %c0_96] : memref<72x256xf32, #tpu.memory_space<vmem>>, vector<72x256xf32>
    %cst_97 = arith.constant dense<0.000000e+00> : vector<8x256xf32>
    %92 = tpu.matmul %60, %91, %cst_97 {dimension_numbers = #tpu.dot_dimension_numbers<[1], [0], [0], [1], [0, 0, 1, 1], [], []>} : vector<8x72xf32>, vector<72x256xf32>, vector<8x256xf32> -> vector<8x256xf32>
    %c0_98 = arith.constant 0 : index
    %c0_99 = arith.constant 0 : index
    %93 = vector.load %arg6[%c0_98, %c0_99] : memref<8x1xf32, #tpu.memory_space<vmem>>, vector<8x1xf32>
    %94 = vector.broadcast %93 : vector<8x1xf32> to vector<8x256xf32>
    %95 = arith.addf %92, %94 : vector<8x256xf32>
    %cst_100 = arith.constant 0.000000e+00 : f32
    %96 = vector.broadcast %cst_100 : f32 to vector<8x256xf32>
    %97 = arith.maximumf %95, %96 : vector<8x256xf32>
    %c0_101 = arith.constant 0 : index
    %c0_102 = arith.constant 0 : index
    %98 = vector.load %arg10[%c0_101, %c0_102] : memref<8x256xf32, #tpu.memory_space<vmem>>, vector<8x256xf32>
    %99 = arith.addf %98, %97 : vector<8x256xf32>
    %cst_103 = arith.constant dense<0.000000e+00> : vector<8xf32>
    %100 = vector.multi_reduction <add>, %99, %cst_103 [1] : vector<8x256xf32> to vector<8xf32>
    %101 = vector.shape_cast %100 : vector<8xf32> to vector<8x1xf32>
    %cst_104 = arith.constant 2.560000e+02 : f32
    %102 = vector.broadcast %cst_104 : f32 to vector<8x1xf32>
    %103 = arith.divf %101, %102 : vector<8x1xf32>
    %c0_105 = arith.constant 0 : index
    %c0_106 = arith.constant 0 : index
    %104 = vector.load %arg8[%c0_105, %c0_106] : memref<8x8xf32, #tpu.memory_space<vmem>>, vector<8x8xf32>
    %cst_107 = arith.constant dense<0.000000e+00> : vector<8x1xf32>
    %105 = tpu.matmul %104, %103, %cst_107 {dimension_numbers = #tpu.dot_dimension_numbers<[1], [0], [0], [1], [0, 0, 1, 1], [], []>} : vector<8x8xf32>, vector<8x1xf32>, vector<8x1xf32> -> vector<8x1xf32>
    %106 = arith.negf %105 : vector<8x1xf32>
    %107 = math.exp %106 : vector<8x1xf32>
    %cst_108 = arith.constant 1.000000e+00 : f32
    %108 = vector.broadcast %cst_108 : f32 to vector<8x1xf32>
    %109 = arith.addf %108, %107 : vector<8x1xf32>
    %110 = arith.divf %108, %109 : vector<8x1xf32>
    %111 = vector.broadcast %110 : vector<8x1xf32> to vector<8x256xf32>
    %112 = arith.mulf %99, %111 : vector<8x256xf32>
    %c0_109 = arith.constant 0 : index
    %c0_110 = arith.constant 0 : index
    %c0_111 = arith.constant 0 : index
    %113 = vector.load %arg9[%c0_109, %c0_110, %c0_111] : memref<1x8x256xf32, #tpu.memory_space<vmem>>, vector<1x8x256xf32>
    %114 = vector.shape_cast %113 : vector<1x8x256xf32> to vector<8x256xf32>
    %115 = vector.shape_cast %112 : vector<8x256xf32> to vector<1x8x256xf32>
    tpu.vector_store %arg9[%c0_109, %c0_110, %c0_111], %115 {strides = array<i32>} : memref<1x8x256xf32, #tpu.memory_space<vmem>>, vector<1x8x256xf32>,
    return
  }
  func.func @transform_0(%arg0: i32) -> (i32, i32, i32) {
    %c0_i32 = arith.constant 0 : i32
    %c0_i32_0 = arith.constant 0 : i32
    %c0_i32_1 = arith.constant 0 : i32
    return %arg0, %c0_i32, %c0_i32_0 : i32, i32, i32
  }
  func.func @transform_1(%arg0: i32) -> (i32, i32) {
    %c0_i32 = arith.constant 0 : i32
    %c0_i32_0 = arith.constant 0 : i32
    %c0_i32_1 = arith.constant 0 : i32
    return %c0_i32, %c0_i32_0 : i32, i32
  }
  func.func @transform_2(%arg0: i32) -> (i32, i32) {
    %c0_i32 = arith.constant 0 : i32
    %c0_i32_0 = arith.constant 0 : i32
    %c0_i32_1 = arith.constant 0 : i32
    return %c0_i32, %c0_i32_0 : i32, i32
  }
  func.func @transform_3(%arg0: i32) -> (i32, i32, i32) {
    %c0_i32 = arith.constant 0 : i32
    %c0_i32_0 = arith.constant 0 : i32
    %c0_i32_1 = arith.constant 0 : i32
    %c0_i32_2 = arith.constant 0 : i32
    return %c0_i32, %c0_i32_0, %c0_i32_1 : i32, i32, i32
  }
  func.func @transform_4(%arg0: i32) -> (i32, i32) {
    %c0_i32 = arith.constant 0 : i32
    %c0_i32_0 = arith.constant 0 : i32
    %c0_i32_1 = arith.constant 0 : i32
    return %c0_i32, %c0_i32_0 : i32, i32
  }
  func.func @transform_5(%arg0: i32) -> (i32, i32) {
    %c0_i32 = arith.constant 0 : i32
    %c0_i32_0 = arith.constant 0 : i32
    %c0_i32_1 = arith.constant 0 : i32
    return %c0_i32, %c0_i32_0 : i32, i32
  }
  func.func @transform_6(%arg0: i32) -> (i32, i32) {
    %c0_i32 = arith.constant 0 : i32
    %c0_i32_0 = arith.constant 0 : i32
    %c0_i32_1 = arith.constant 0 : i32
    return %c0_i32, %c0_i32_0 : i32, i32
  }
  func.func @transform_7(%arg0: i32) -> (i32, i32) {
    %c0_i32 = arith.constant 0 : i32
    %c0_i32_0 = arith.constant 0 : i32
    %c0_i32_1 = arith.constant 0 : i32
    return %c0_i32, %c0_i32_0 : i32, i32
  }
  func.func @transform_8(%arg0: i32) -> (i32, i32, i32) {
    %c0_i32 = arith.constant 0 : i32
    %c0_i32_0 = arith.constant 0 : i32
    %c0_i32_1 = arith.constant 0 : i32
    return %arg0, %c0_i32, %c0_i32_0 : i32, i32, i32
  }
}

</mosaic_0001>

<bundles_post_ra>
// kernel: tpu_custom_call.1
= control target key start
LH: loop header
LB: loop body
LE: loop exit
PB: predicated region body
PF: predicated region fallthrough
CT: control target
= control target key end

     0   :  { %13 = vsyncpa [#allocation7], 0  ;;  %s1810_s0 = inlined_call_operand.vmem [shape: f32[2,4,256], index: 0, kind: input, shape index: {}]   ;;  %s1811_s1 = inlined_call_operand.vmem [shape: f32[8,4], index: 1, kind: input, shape index: {}]   ;;  %s1812_s2 = inlined_call_operand.vmem [shape: f32[8,1], index: 2, kind: input, shape index: {}]   ;;  %s1813_s3 = inlined_call_operand.vmem [shape: f32[1,4,36], index: 3, kind: input, shape index: {}]   ;;  %s1814_s4 = inlined_call_operand.vmem [shape: f32[8,72], index: 4, kind: input, shape index: {}]   ;;  %s1815_s5 = inlined_call_operand.vmem [shape: f32[8,1], index: 5, kind: input, shape index: {}]   ;;  %s1816_s6 = inlined_call_operand.vmem [shape: f32[2,256], index: 6, kind: input, shape index: {}]   ;;  %s1817_s7 = inlined_call_operand.vmem [shape: f32[8,8], index: 7, kind: input, shape index: {}]   ;;  %s1818_s8 = inlined_call_operand.hbm [shape: f32[2,8,256], index: 8, kind: output, shape index: {}]  }
   0x1   :  { %15 = vsyncpa [#allocation7 + $0x1], 0  ;;  %s1475_s27 = smov 0   ;;  %s1477_s28 = smov 0  }
   0x2   :  { %s1479_s29 = smov 0   ;;  %s1481_s30 = smov 0  }
   0x3 LB: > { %s1496_s9 = sadd.s32 4294967295, %s1410_s30   ;;  %s1230_s10 = sadd.s32 4294967294, %s1410_s30   ;;  %s1410_s30 = sphi %s1481_s30, %s1824_s30   ;;  %s1406_s29 = sphi %s1479_s29, %s1823_s29   ;;  %s1402_s28 = sphi %s1477_s28, %s1822_s28   ;;  %s1398_s27 = sphi %s1475_s27, %s1821_s27  }
   0x4   : > { %s1500_s11 = sadd.s32 1, %s1410_s30   ;;  %s201_s12 = sadd.s32 1, %s1406_s29 }
   0x5   : > { %s198_s13 = ssub.s32 %s1410_s30, %s1500_s11  ;;  %p211_p0 = scmp.ne.s32.totalorder %s1406_s29, %s1402_s28 }
   0x6   : > { %p199_p1 = scmp.eq.s32.totalorder %s198_s13, 0  ;;  %p212_p2 = scmp.eq.s32.totalorder %s1496_s9, 1 }
   0x7   : > { %p217_p3 = scmp.ne.s32.totalorder %s1402_s28, %s1398_s27  ;;  %p218_p4 = scmp.eq.s32.totalorder %s1230_s10, 1 }
   0x8   : > { %s1511_s14 = scalar_select %p199_p1, %s1406_s29, %s201_s12  }
   0x9   : > { %p1513_p5 = por %p212_p2, %p211_p0  ;;  %p1517_p6 = por %p218_p4, %p217_p3 }
   0xa   : > { %p1233_p7 = scmp.ge.s32.totalorder %s1410_s30, 1  ;;  %p265_p8 = scmp.lt.s32.totalorder %s1410_s30, 3 }
   0xc   : > { %p266_p9 = pnand %p1233_p7, %p265_p8 }
   0xd   : > { %p299_p10 = scmp.lt.s32.totalorder (!%p266_p9), %s1496_s9, 1  ;;  %v1412_v0 = vmov (!%p266_p9), 0.0   ;;  %v1413_v1 = vmov (!%p266_p9), 0   ;;  %v313_v2 = vld [vmem:[%s1812_s2] sm:$0xff] (!%p266_p9)  ;;  %vm325_vm0 = vcmask (!%p266_p9), 1043456   ;;  %vm321_vm1 = vcmask (!%p266_p9), 31744  }
   0xe   : > { %269 = sbr.rel (%p266_p9) target bundleno = 1806 (0x70e), region = 52  ;;  %394 = vmatprep.mubr.f32.mxu1 (!%p266_p9), %v1412_v0  ;;  %1341 = vset.pattern.permute.xlu0 (!%p266_p9), %v1413_v1  ;;  %v311_v5 = vld [vmem:[%s1811_s1] sm:$0xff] (!%p266_p9)  ;;  %vm304_vm2 = vcmask (!%p266_p9), 138240   ;;  %vm306_vm3 = vcmask (!%p266_p9), 277640   ;;  %v426_v10 = vlaneseq (!%p266_p9)  ;;  %s1414_s12 = smov (!%p266_p9), 17   ;;  %vm417_vm4 = vcmask (!%p266_p9), 1043592  }
   0xf   : > { %316 = vperm.xlu0 (!%p266_p9), %1341, %v313_v2   ;;  %1048 = vmatprep.mubr.f32.mxu0 (!%p266_p9), %v1412_v0  ;;  %305 = vst.msk [vmem:[#allocation4] sm:$0xff] (!%p266_p9), %vm304_vm2, %v1412_v0  ;;  %v308_v16 = vld [vmem:[%s1816_s6] ss:$2 sm:$0x3] (!%p266_p9)  ;;  %s1415_s18 = smov (!%p266_p9), 16   ;;  %s1418_s21 = smov (!%p266_p9), 32  }
  0x10   : > { %1342 = vset.pattern.permute.xlu1 (!%p266_p9), %v1413_v1  ;;  %307 = vst.msk [vmem:[#allocation4 + $0x10] sm:$0xff] (!%p266_p9), %vm306_vm3, %v1412_v0  ;;  %v427_v14 = vshrl.u32 (!%p266_p9), %v426_v10, 7  ;;  %v1237_v26 = vld [vmem:[%s1816_s6 + $0x1] ss:$2 sm:$0x3] (!%p266_p9)  ;;  %s1419_s22 = smov (!%p266_p9), 34  }
  0x11   : > { %vm420_vm5 = vcmask (!%p266_p9), 134144   ;;  %s1421_s24 = smov (!%p266_p9), 126   ;;  %s1422_s25 = smov (!%p266_p9), 127   ;;  %vm596_vm6 = vcmask (!%p266_p9), 261120   ;;  %vm478_vm7 = vcmask (!%p266_p9), 15360   ;;  %vm509_vm8 = vcmask (!%p266_p9), 130048  }
  0x12   : > { %v432_v15 = vsub.s32 (!%p266_p9), 1, %v427_v14  ;;  %v428_v17 = vsub.s32 (!%p266_p9), 0, %v427_v14  ;;  %s1423_s26 = smov (!%p266_p9), 96   ;;  %s1424_s10 = smov (!%p266_p9), 95   ;;  %vm562_vm9 = vcmask (!%p266_p9), 146432   ;;  %vm649_vm10 = vcmask (!%p266_p9), 277504  }
  0x13   : > { %s1425_s13 = smov (!%p266_p9), 112   ;;  %s1426_s17 = smov (!%p266_p9), 110   ;;  %vm548_vm11 = vcmask (!%p266_p9), 908288   ;;  %vm455_vm12 = vcmask (!%p266_p9), 1039360   ;;  %vm613_vm13 = vcmask (!%p266_p9), 785408   ;;  %vm495_vm14 = vcmask (!%p266_p9), 1031168  }
  0x14   : > { %v1561_v23 = vrot.slane (!%p266_p9), %v308_v16, %v432_v15  ;;  %v1565_v25 = vrot.slane (!%p266_p9), %v308_v16, %v428_v17  ;;  %v473_v27 = vrot.slane (!%p266_p9), %v1237_v26, %v432_v15  ;;  %v469_v28 = vrot.slane (!%p266_p9), %v1237_v26, %v428_v17 }
  0x15   : > { %s300_s19 = scalar_select %p299_p10, %s1496_s9, 1  ;;  %vm635_vm15 = vcmask 777216   ;;  %vm582_vm3 = vcmask 900096  }
  0x17   : > { %s1252_s20 = sshll.u32 %s300_s19, 3  ;;  %s1416_s19 = smov 2  }
  0x18   : > { %s303_s23 = scalar_lea.vmem %s1810_s0, %s1252_s20  ;;  %s1417_s20 = smov 18  }
  0x19   : > { %v312_v3 = vld [vmem:[%s303_s23] sm:$0xff]  ;;  %s1420_s23 = smov 111  }
  0x1a   : > { %v320_v4 = vcombine.high %v312_v3, %v312_v3 }
  0x1c   : > { %1238 = vmatprep.subr.msk.mxu1 %vm325_vm0, %v320_v4 }
  0x1d   : > { %1239 = vmatpush1.msk.msra.mxu1 %vm325_vm0, %v312_v3 }
  0x1e   : > { %1240 = vmatmul.mubr.msk.f32.vlgmr.msra.gmra.mrb[0].mxu1 %vm321_vm1, %v311_v5  ;;  %vm529_vm1 = vcmask 916480  }
  0x1f   : > { %757 = vmatprep.mubr.f32.mxu1 %v1412_v0 }
  0x8e   : > { %v317_v6 = vpop.permute.xlu0 %316 }
  0xf1   : > { %v396_v7 = vpop.f32.mrb[0].mxu1 }
  0xf2   : > { %v1542_v8 = vadd.f32 %v396_v7, %v317_v6  ;;  %v398_v9 = vpop.f32.mrb[1].mxu1 }
  0xf3   : > { %v1544_v11 = vadd.f32 %v398_v9, %v317_v6 }
  0xf4   : > { %v401_v12 = vmax.f32 %v1542_v8, 0.0 }
  0xf5   : > { %v402_v13 = vmax.f32 %v1544_v11, 0.0 }
  0xf6   : > { %403 = vst [vmem:[#allocation2] sm:$0xff] %v401_v12 }
  0xf7   : > { %404 = vst [vmem:[#allocation2 + $0x8] sm:$0xff] %v402_v13 }
  0xfd   : > { %v768_v18 = vld [vmem:[#allocation2] sm:$0xf0]  ;;  %v1555_v19 = vld [vmem:[#allocation2] sm:$0xf] }
  0xfe   : > { %v770_v20 = vmul.f32 2.0, %v768_v18  ;;  %v769_v21 = vld [vmem:[#allocation2 + $0x8] sm:$0xf0]  ;;  %409 = vrot.lane.b32.xlu0 %v1555_v19, %s1414_s12  ;;  %v1559_v22 = vld [vmem:[#allocation2 + $0x8] sm:$0xf] }
  0xff   : > { %v771_v24 = vmul.f32 2.0, %v769_v21  ;;  %411 = vrot.lane.b32.xlu1 %v1559_v22, %s1414_s12 }
 0x100   : > { %772 = vst [vmem:[#allocation3] sm:$0xf0] %v770_v20 }
 0x101   : > { %773 = vst [vmem:[#allocation3 + $0x8] sm:$0xf0] %v771_v24 }
 0x102   : > { %507 = vrot.lane.b32.xlu0 %v1561_v23, %s1415_s18 }
 0x103   : > { %505 = vrot.lane.b32.xlu1 %v1565_v25, %s1415_s18  ;;  %s1427_s18 = smov 94  }
 0x106   : > { %476 = vrot.lane.b32.xlu0 %v473_v27, %s1416_s19 }
 0x107   : > { %474 = vrot.lane.b32.xlu1 %v469_v28, %s1416_s19 }
 0x10a   : > { %560 = vrot.lane.b32.xlu0 %v473_v27, %s1417_s20 }
 0x10b   : > { %558 = vrot.lane.b32.xlu1 %v469_v28, %s1417_s20 }
 0x10e   : > { %594 = vrot.lane.b32.xlu0 %v1561_v23, %s1418_s21 }
 0x10f   : > { %592 = vrot.lane.b32.xlu1 %v1565_v25, %s1418_s21 }
 0x112   : > { %647 = vrot.lane.b32.xlu0 %v473_v27, %s1419_s22 }
 0x113   : > { %645 = vrot.lane.b32.xlu1 %v469_v28, %s1419_s22 }
 0x170   : > { %v410_v29 = vpop.permute.xlu0 %409 }
 0x171   : > { %418 = vst.msk [vmem:[#allocation4] sm:$0xf] %vm417_vm4, %v410_v29  ;;  %v412_v30 = vpop.permute.xlu1 %411  ;;  %vm666_vm4 = vcmask 769024  }
 0x172   : > { %v413_v31 = vsel %vm304_vm2, %v410_v29, %v412_v30  ;;  %421 = vst.msk [vmem:[#allocation4 + $0x10] sm:$0xf] %vm420_vm5, %v412_v30  ;;  %vm683_vm5 = vcmask 293888  }
 0x173   : > { %419 = vst [vmem:[#allocation4 + $0x8] sm:$0xf] %v413_v31 }
 0x174   : > { %v1575_v32 = vpop.permute.xlu0 %507 }
 0x175   : > { %v1577_v33 = vpop.permute.xlu1 %505 }
 0x176   : > { %v1625_v18 = vsel %vm509_vm8, %v1577_v33, %v1575_v32 }
 0x178   : > { %v423_v34 = vld [vmem:[#allocation4] sm:$0xf]  ;;  %v1579_v35 = vpop.permute.xlu0 %476 }
 0x179   : > { %v462_v36 = vld [vmem:[#allocation4] sm:$0xf]  ;;  %v436_v37 = vmul.f32 %v1565_v25, %v423_v34  ;;  %v1582_v38 = vpop.permute.xlu1 %474  ;;  %v538_v42 = vld [vmem:[#allocation4 + $0x10] sm:$0xf] }
 0x17a   : > { %v536_v39 = vld [vmem:[#allocation4] sm:$0xf]  ;;  %v424_v40 = vld [vmem:[#allocation4 + $0x8] sm:$0xf]  ;;  %v483_v41 = vmul.f32 %v1582_v38, %v462_v36  ;;  %546 = vrot.lane.b32.xlu1 %v538_v42, %s1420_s23  ;;  %v591_v48 = vld [vmem:[#allocation4 + $0x10] sm:$0xf]  ;;  %v1610_v63 = vsel %vm478_vm7, %v1582_v38, %v1579_v35 }
 0x17b   : > { %542 = vrot.lane.b32.xlu0 %v536_v39, %s1420_s23  ;;  %438 = vst [vmem:[#allocation5] sm:$0xf] %v436_v37  ;;  %v437_v43 = vmul.f32 %v1561_v23, %v424_v40  ;;  %v440_v44 = vld [vmem:[#allocation4] sm:$0xf]  ;;  %v537_v51 = vld [vmem:[#allocation4 + $0x8] sm:$0xf] }
 0x17c   : > { %v1588_v45 = vpop.permute.xlu0 %560  ;;  %v446_v46 = vrot.slane %v440_v44, 4  ;;  %v442_v52 = vld [vmem:[#allocation4 + $0x10] sm:$0xf]  ;;  %v441_v58 = vld [vmem:[#allocation4 + $0x8] sm:$0xf]  ;;  %vm1067_vm7 = vcmask 64512  }
 0x17d   : > { %439 = vst [vmem:[#allocation5 + $0x8] sm:$0xf] %v437_v43  ;;  %v1592_v47 = vpop.permute.xlu1 %558  ;;  %v622_v53 = vld [vmem:[#allocation4 + $0x10] sm:$0xf]  ;;  %v448_v54 = vrot.slane %v442_v52, 4  ;;  %v447_v61 = vrot.slane %v441_v58, 4 }
 0x17e   : > { %449 = vrot.lane.b32.xlu1 %v446_v46, %s1422_s25  ;;  %v464_v55 = vld [vmem:[#allocation4 + $0x10] sm:$0xf]  ;;  %v628_v56 = vrot.slane %v622_v53, 4  ;;  %v502_v62 = vld [vmem:[#allocation4] sm:$0xf]  ;;  %v1629_v21 = vsel %vm562_vm9, %v1592_v47, %v1588_v45 }
 0x17f   : > { %489 = vrot.lane.b32.xlu0 %v483_v41, %s1421_s24  ;;  %v485_v59 = vmul.f32 %v1579_v35, %v464_v55  ;;  %v463_v1 = vld [vmem:[#allocation4 + $0x8] sm:$0xf]  ;;  %v504_v4 = vld [vmem:[#allocation4 + $0x10] sm:$0xf]  ;;  %v514_v5 = vmul.f32 %v1577_v33, %v502_v62  ;;  %v589_v27 = vld [vmem:[#allocation4] sm:$0xf] }
 0x180   : > { %v1594_v49 = vpop.permute.xlu0 %594  ;;  %v590_v2 = vld [vmem:[#allocation4 + $0x8] sm:$0xf]  ;;  %v484_v6 = vmul.f32 %v1610_v63, %v463_v1  ;;  %v516_v9 = vmul.f32 %v1575_v32, %v504_v4  ;;  %v557_v10 = vld [vmem:[#allocation4 + $0x10] sm:$0xf]  ;;  %v555_v29 = vld [vmem:[#allocation4] sm:$0xf] }
 0x181   : > { %v603_v50 = vmul.f32 %v1594_v49, %v591_v48  ;;  %v1599_v57 = vpop.permute.xlu1 %592  ;;  %v621_v7 = vld [vmem:[#allocation4 + $0x8] sm:$0xf]  ;;  %v569_v15 = vmul.f32 %v1588_v45, %v557_v10  ;;  %v520_v16 = vrot.slane %v514_v5, 4  ;;  %v567_v34 = vmul.f32 %v1592_v47, %v555_v29  ;;  %v620_v43 = vld [vmem:[#allocation4] sm:$0xf] }
 0x182   : > { %v1606_v60 = vsel %vm596_vm6, %v1599_v57, %v1594_v49  ;;  %v627_v14 = vrot.slane %v621_v7, 4  ;;  %v503_v17 = vld [vmem:[#allocation4 + $0x8] sm:$0xf]  ;;  %v522_v20 = vrot.slane %v516_v9, 4  ;;  %v601_v30 = vmul.f32 %v1599_v57, %v589_v27 }
 0x183   : > { %544 = vrot.lane.b32.xlu0 %v537_v51, %s1420_s23  ;;  %611 = vrot.lane.b32.xlu1 %v603_v50, %s1423_s26  ;;  %v602_v3 = vmul.f32 %v1606_v60, %v590_v2  ;;  %v575_v24 = vrot.slane %v569_v15, 4  ;;  %v515_v26 = vmul.f32 %v1625_v18, %v503_v17  ;;  %v556_v28 = vld [vmem:[#allocation4 + $0x8] sm:$0xf]  ;;  %v573_v42 = vrot.slane %v567_v34, 4  ;;  %v642_v50 = vld [vmem:[#allocation4] sm:$0xf] }
 0x184   : > { %v568_v31 = vmul.f32 %v1629_v21, %v556_v28  ;;  %v1637_v37 = vpop.permute.xlu0 %647  ;;  %v643_v44 = vld [vmem:[#allocation4 + $0x8] sm:$0xf]  ;;  %v626_v48 = vrot.slane %v620_v43, 4  ;;  %v644_v51 = vld [vmem:[#allocation4 + $0x10] sm:$0xf]  ;;  %vm786_vm6 = vcmask 1047688  }
 0x185   : > { %v521_v36 = vrot.slane %v515_v26, 4  ;;  %v1639_v39 = vpop.permute.xlu1 %645  ;;  %v656_v53 = vmul.f32 %v1637_v37, %v644_v51 }
 0x186   : > { %v574_v40 = vrot.slane %v568_v31, 4  ;;  %v1645_v41 = vsel %vm649_vm10, %v1639_v39, %v1637_v37  ;;  %v654_v52 = vmul.f32 %v1639_v39, %v642_v50 }
 0x187   : > { %453 = vrot.lane.b32.xlu0 %v448_v54, %s1422_s25  ;;  %633 = vrot.lane.b32.xlu1 %v628_v56, %s1424_s10  ;;  %v655_v46 = vmul.f32 %v1645_v41, %v643_v44 }
 0x18b   : > { %493 = vrot.lane.b32.xlu0 %v485_v59, %s1421_s24  ;;  %451 = vrot.lane.b32.xlu1 %v447_v61, %s1422_s25 }
 0x18f   : > { %609 = vrot.lane.b32.xlu0 %v602_v3, %s1423_s26  ;;  %491 = vrot.lane.b32.xlu1 %v484_v6, %s1421_s24 }
 0x193   : > { %631 = vrot.lane.b32.xlu0 %v627_v14, %s1424_s10  ;;  %523 = vrot.lane.b32.xlu1 %v520_v16, %s1425_s13 }
 0x197   : > { %527 = vrot.lane.b32.xlu0 %v522_v20, %s1425_s13  ;;  %580 = vrot.lane.b32.xlu1 %v575_v24, %s1426_s17 }
 0x19b   : > { %607 = vrot.lane.b32.xlu0 %v601_v30, %s1423_s26  ;;  %525 = vrot.lane.b32.xlu1 %v521_v36, %s1425_s13 }
 0x19f   : > { %578 = vrot.lane.b32.xlu0 %v574_v40, %s1426_s17  ;;  %576 = vrot.lane.b32.xlu1 %v573_v42, %s1426_s17 }
 0x1a3   : > { %662 = vrot.lane.b32.xlu0 %v655_v46, %s1427_s18  ;;  %629 = vrot.lane.b32.xlu1 %v626_v48, %s1424_s10 }
 0x1a7   : > { %660 = vrot.lane.b32.xlu0 %v654_v52, %s1427_s18  ;;  %664 = vrot.lane.b32.xlu1 %v656_v53, %s1427_s18 }
 0x1ec   : > { %v547_v55 = vpop.permute.xlu1 %546 }
 0x1ed   : > { %v543_v54 = vpop.permute.xlu0 %542 }
 0x1f0   : > { %v450_v58 = vpop.permute.xlu1 %449 }
 0x1f1   : > { %v490_v56 = vpop.permute.xlu0 %489 }
 0x1f5   : > { %v545_v59 = vpop.permute.xlu0 %544  ;;  %v612_v1 = vpop.permute.xlu1 %611 }
 0x1f6   : > { %v549_v61 = vsel %vm548_vm11, %v543_v54, %v545_v59  ;;  %v550_v62 = vsel %vm548_vm11, %v545_v59, %v547_v55 }
 0x1f7   : > { %553 = vst [vmem:[#allocation5 + $0x20] sm:$0xf] %v549_v61  ;;  %554 = vst [vmem:[#allocation5 + $0x28] sm:$0xf] %v550_v62 }
 0x1f9   : > { %v454_v2 = vpop.permute.xlu0 %453  ;;  %v634_v3 = vpop.permute.xlu1 %633 }
 0x1fd   : > { %v494_v4 = vpop.permute.xlu0 %493  ;;  %v452_v5 = vpop.permute.xlu1 %451 }
 0x1fe   : > { %v456_v6 = vsel %vm455_vm12, %v450_v58, %v452_v5  ;;  %v457_v7 = vsel %vm455_vm12, %v452_v5, %v454_v2 }
 0x1ff   : > { %460 = vst [vmem:[#allocation5] sm:$0xf0] %v456_v6  ;;  %461 = vst [vmem:[#allocation5 + $0x8] sm:$0xf0] %v457_v7  ;;  %v422_v7 = vld [vmem:[%s1813_s3] sm:$0xf] }
 0x201   : > { %v610_v9 = vpop.permute.xlu0 %609  ;;  %v492_v14 = vpop.permute.xlu1 %491 }
 0x202   : > { %v615_v10 = vsel %vm613_vm13, %v610_v9, %v612_v1  ;;  %v496_v15 = vsel %vm495_vm14, %v490_v56, %v492_v14  ;;  %v497_v16 = vsel %vm495_vm14, %v492_v14, %v494_v4 }
 0x203   : > { %619 = vst [vmem:[#allocation5 + $0x38] sm:$0xf] %v615_v10  ;;  %500 = vst [vmem:[#allocation5 + $0x10] sm:$0xf] %v496_v15 }
 0x204   : > { %501 = vst [vmem:[#allocation5 + $0x18] sm:$0xf] %v497_v16 }
 0x205   : > { %v632_v17 = vpop.permute.xlu0 %631  ;;  %v524_v24 = vpop.permute.xlu1 %523 }
 0x206   : > { %v637_v20 = vsel %vm635_vm15, %v632_v17, %v634_v3  ;;  %v674_v48 = vld [vmem:[#allocation5 + $0x8] sm:$0xff]  ;;  %v673_v52 = vld [vmem:[#allocation5] sm:$0xff] }
 0x207   : > { %641 = vst [vmem:[#allocation5 + $0x38] sm:$0xf0] %v637_v20 }
 0x209   : > { %v528_v26 = vpop.permute.xlu0 %527  ;;  %v581_v27 = vpop.permute.xlu1 %580 }
 0x20d   : > { %v608_v28 = vpop.permute.xlu0 %607  ;;  %v526_v30 = vpop.permute.xlu1 %525 }
 0x20e   : > { %v614_v29 = vsel %vm613_vm13, %v608_v28, %v610_v9  ;;  %v530_v31 = vsel %vm529_vm1, %v524_v24, %v526_v30  ;;  %v531_v34 = vsel %vm529_vm1, %v526_v30, %v528_v26  ;;  %v680_v62 = vld [vmem:[#allocation5 + $0x38] sm:$0xff] }
 0x20f   : > { %618 = vst [vmem:[#allocation5 + $0x30] sm:$0xf] %v614_v29  ;;  %534 = vst [vmem:[#allocation5 + $0x10] sm:$0xf0] %v530_v31 }
 0x210   : > { %535 = vst [vmem:[#allocation5 + $0x18] sm:$0xf0] %v531_v34 }
 0x211   : > { %v579_v36 = vpop.permute.xlu0 %578  ;;  %v577_v42 = vpop.permute.xlu1 %576 }
 0x212   : > { %v584_v40 = vsel %vm582_vm3, %v579_v36, %v581_v27  ;;  %v583_v43 = vsel %vm582_vm3, %v577_v42, %v579_v36 }
 0x213   : > { %588 = vst [vmem:[#allocation5 + $0x28] sm:$0xf0] %v584_v40  ;;  %587 = vst [vmem:[#allocation5 + $0x20] sm:$0xf0] %v583_v43 }
 0x215   : > { %v663_v44 = vpop.permute.xlu0 %662  ;;  %v630_v46 = vpop.permute.xlu1 %629 }
 0x216   : > { %v636_v50 = vsel %vm635_vm15, %v630_v46, %v632_v17  ;;  %v675_v53 = vld [vmem:[#allocation5 + $0x10] sm:$0xff] }
 0x217   : > { %v676_v51 = vld [vmem:[#allocation5 + $0x18] sm:$0xff]  ;;  %640 = vst [vmem:[#allocation5 + $0x30] sm:$0xf0] %v636_v50  ;;  %v1263_v55 = vpack.c.bf16 %v675_v53, %v673_v52 }
 0x218   : > { %v1261_v54 = vpack.c.bf16 %v676_v51, %v674_v48 }
 0x219   : > { %v661_v56 = vpop.permute.xlu0 %660  ;;  %v665_v59 = vpop.permute.xlu1 %664 }
 0x21a   : > { %v667_v58 = vsel %vm666_vm4, %v661_v56, %v663_v44  ;;  %1262 = vmatprep.subr.bf16.mxu1 %v1261_v54  ;;  %v678_v61 = vld [vmem:[#allocation5 + $0x28] sm:$0xff]  ;;  %v668_v1 = vsel %vm666_vm4, %v663_v44, %v665_v59  ;;  %v677_v3 = vld [vmem:[#allocation5 + $0x20] sm:$0xff] }
 0x21b   : > { %671 = vst [vmem:[#allocation5 + $0x40] sm:$0xf] %v667_v58  ;;  %1264 = vmatpush1.bf16.msra.mxu1 %v1263_v55  ;;  %v1265_v2 = vpack.c.bf16 %v680_v62, %v678_v61  ;;  %672 = vst [vmem:[#allocation5 + $0x48] sm:$0xf] %v668_v1 }
 0x21d   : > { %1266 = vmatprep.subr.bf16.mxu1 %v1265_v2 }
 0x21e   : > { %v679_v4 = vld [vmem:[#allocation5 + $0x30] sm:$0xff] }
 0x21f   : > { %v1267_v5 = vpack.c.bf16 %v679_v4, %v677_v3 }
 0x221   : > { %1268 = vmatpush1.bf16.msra.mxu1 %v1267_v5 }
 0x222   : > { %v682_v6 = vld [vmem:[#allocation5 + $0x48] sm:$0xf]  ;;  %v681_v9 = vld [vmem:[#allocation5 + $0x40] sm:$0xf] }
 0x223   : > { %1241 = vmatprep.subr.msk.mxu1 %vm325_vm0, %v682_v6 }
 0x225   : > { %1242 = vmatpush1.msk.msra.mxu1 %vm325_vm0, %v681_v9  ;;  %vm980_vm0 = vcmask 588800  }
 0x226   : > { %1243 = vmatmul.mubr.msk.f32.vlgmr.msra.gmra.mrb[2].mxu1 %vm683_vm5, %v422_v7  ;;  %1256 = vmatprep.subr.mxu1 %v1412_v0 }
 0x2f9   : > { %v759_v10 = vpop.f32.mrb[2].mxu1 }
 0x2fa   : > { %v764_v14 = vadd.f32 %v759_v10, %v1555_v19  ;;  %v761_v15 = vpop.f32.mrb[3].mxu1 }
 0x2fb   : > { %v765_v16 = vadd.f32 %v761_v15, %v1559_v22 }
 0x2fc   : > { %766 = vst [vmem:[#allocation3] sm:$0xf] %v764_v14 }
 0x2fd   : > { %767 = vst [vmem:[#allocation3 + $0x8] sm:$0xf] %v765_v16 }
 0x303   : > { %v774_v17 = vld [vmem:[#allocation3] sm:$0xff] }
 0x304   : > { %778 = vrot.lane.b32.xlu1 %v774_v17, %s1414_s12  ;;  %v775_v20 = vld [vmem:[#allocation3 + $0x8] sm:$0xff] }
 0x305   : > { %780 = vrot.lane.b32.xlu0 %v775_v20, %s1414_s12 }
 0x376   : > { %v779_v24 = vpop.permute.xlu1 %778 }
 0x377   : > { %v781_v26 = vpop.permute.xlu0 %780  ;;  %787 = vst.msk [vmem:[#allocation4] sm:$0xff] %vm786_vm6, %v779_v24 }
 0x378   : > { %v782_v27 = vsel %vm304_vm2, %v779_v24, %v781_v26  ;;  %789 = vst.msk [vmem:[#allocation4 + $0x10] sm:$0xff] %vm304_vm2, %v781_v26  ;;  %vm1428_vm2 = vmmov 0  }
 0x379   : > { %788 = vst [vmem:[#allocation4 + $0x8] sm:$0xff] %v782_v27  ;;  %v1685_v19 = vmul.f32 %v782_v27, %v1561_v23  ;;  %1258 = vmatprep.mubr.msk.f32.mxu1 %vm1428_vm2, %v1412_v0 }
 0x37b   : > { %796 = vst [vmem:[#allocation5 + $0x8] sm:$0xff] %v1685_v19 }
 0x37e   : > { %v797_v22 = vld [vmem:[#allocation4] sm:$0xff] }
 0x37f   : > { %803 = vrot.lane.b32.xlu1 %v797_v22, %s1422_s25  ;;  %863 = vrot.lane.b32.xlu0 %v797_v22, %s1420_s23  ;;  %v1691_v28 = vmul.f32 %v797_v22, %v1565_v25  ;;  %v859_v29 = vld [vmem:[#allocation4 + $0x10] sm:$0xff]  ;;  %v818_v23 = vmul.f32 %v797_v22, %v1582_v38  ;;  %v839_v25 = vmul.f32 %v797_v22, %v1577_v33 }
 0x380   : > { %v899_v30 = vmul.f32 %v797_v22, %v1599_v57  ;;  %v878_v31 = vmul.f32 %v797_v22, %v1592_v47  ;;  %v819_v38 = vmul.f32 %v782_v27, %v1610_v63  ;;  %v820_v34 = vmul.f32 %v859_v29, %v1579_v35 }
 0x381   : > { %795 = vst [vmem:[#allocation5] sm:$0xff] %v1691_v28  ;;  %v840_v33 = vmul.f32 %v782_v27, %v1625_v18  ;;  %v841_v36 = vmul.f32 %v859_v29, %v1575_v32  ;;  %v879_v47 = vmul.f32 %v782_v27, %v1629_v21  ;;  %v880_v57 = vmul.f32 %v859_v29, %v1588_v45 }
 0x382   : > { %v900_v35 = vmul.f32 %v782_v27, %v1606_v60  ;;  %v901_v63 = vmul.f32 %v859_v29, %v1594_v49  ;;  %v939_v32 = vmul.f32 %v782_v27, %v1645_v41  ;;  %v938_v45 = vmul.f32 %v797_v22, %v1639_v39  ;;  %v974_v49 = vld [vmem:[%s1815_s5] sm:$0xff] }
 0x383   : > { %867 = vrot.lane.b32.xlu1 %v859_v29, %s1420_s23  ;;  %807 = vrot.lane.b32.xlu0 %v859_v29, %s1422_s25  ;;  %v940_v18 = vmul.f32 %v859_v29, %v1637_v37 }
 0x387   : > { %927 = vrot.lane.b32.xlu1 %v859_v29, %s1424_s10  ;;  %824 = vrot.lane.b32.xlu0 %v818_v23, %s1421_s24 }
 0x38b   : > { %865 = vrot.lane.b32.xlu0 %v782_v27, %s1420_s23  ;;  %805 = vrot.lane.b32.xlu1 %v782_v27, %s1422_s25 }
 0x38f   : > { %925 = vrot.lane.b32.xlu0 %v782_v27, %s1424_s10  ;;  %845 = vrot.lane.b32.xlu1 %v839_v25, %s1425_s13 }
 0x393   : > { %905 = vrot.lane.b32.xlu0 %v899_v30, %s1423_s26  ;;  %884 = vrot.lane.b32.xlu1 %v878_v31, %s1426_s17 }
 0x397   : > { %826 = vrot.lane.b32.xlu0 %v819_v38, %s1421_s24  ;;  %828 = vrot.lane.b32.xlu1 %v820_v34, %s1421_s24  ;;  %v790_v34 = vld [vmem:[%s1814_s4] sm:$0xff] }
 0x39b   : > { %847 = vrot.lane.b32.xlu0 %v840_v33, %s1425_s13  ;;  %849 = vrot.lane.b32.xlu1 %v841_v36, %s1425_s13  ;;  %s1253_s13 = sshll.u32 %s1496_s9, 8  ;;  %s1429_s9 = smov [#allocation6]  }
 0x39c   : > { %s1768_s12 = scalar_lea.hbm %s1818_s8, %s1253_s13  ;;  %s1352_s23 = sshll.u32 %s1429_s9, 4  ;;  %s1353_s23 = int_to_ptr.vmem [resolvable:$false] %s1352_s23 }
 0x39d   : > { %s1354_s24 = scalar_lea.vmem %s1353_s23, 512 }
 0x39f   : > { %886 = vrot.lane.b32.xlu0 %v879_v47, %s1426_s17  ;;  %888 = vrot.lane.b32.xlu1 %v880_v57, %s1426_s17 }
 0x3a3   : > { %907 = vrot.lane.b32.xlu0 %v900_v35, %s1423_s26  ;;  %909 = vrot.lane.b32.xlu1 %v901_v63, %s1423_s26  ;;  %s296_s26 = sand.u32 1, %s1402_s28  }
 0x3a4   : > { %s1157_s21 = scalar_lea.sflag [#allocation7], %s296_s26 }
 0x3a7   : > { %946 = vrot.lane.b32.xlu0 %v939_v32, %s1427_s18  ;;  %923 = vrot.lane.b32.xlu1 %v797_v22, %s1424_s10  ;;  %s1234_s10 = sshll.u32 %s296_s26, 4 }
 0x3a8   : > { %s298_s17 = scalar_lea.vmem [#allocation6], %s1234_s10 }
 0x3ab   : > { %944 = vrot.lane.b32.xlu0 %v938_v45, %s1427_s18  ;;  %948 = vrot.lane.b32.xlu1 %v940_v18, %s1427_s18  ;;  %s1171_s18 = sshll.u32 %s298_s17, 4  ;;  %s1770_s18 = int_to_ptr.vmem [resolvable:$true] %s1171_s18 }
 0x3ac   : > { %s1348_s22 = scalar_lea.vmem %s1770_s18, 256  ;;  %p1355_p0 = scmp.lt.s32.totalorder %s1770_s18, %s1353_s23 }
 0x3ad   : > { %p1349_p11 = scmp.ne.s32.totalorder %s1770_s18, %s1348_s22  ;;  %p1356_p1 = scmp.lt.s32.totalorder %s1354_s24, %s1348_s22 }
 0x3af   : > { %977 = vperm.xlu1 %1342, %v974_v49   ;;  %p1350_p12 = pnand %p1349_p11, %p1513_p5  ;;  %p1357_p2 = por %p1356_p1, %p1355_p0 }
 0x3b1   : > { %p1351_p13 = pneg %p1350_p12 }
 0x3b3   : > { %p1358_p3 = pnand %p1357_p2, %p1351_p13 }
 0x3f1   : > { %v804_v60 = vpop.permute.xlu1 %803  ;;  %v864_v21 = vpop.permute.xlu0 %863 }
 0x3f5   : > { %v868_v41 = vpop.permute.xlu1 %867  ;;  %v808_v40 = vpop.permute.xlu0 %807 }
 0x3f9   : > { %v928_v42 = vpop.permute.xlu1 %927  ;;  %v825_v43 = vpop.permute.xlu0 %824 }
 0x3fd   : > { %v806_v44 = vpop.permute.xlu1 %805  ;;  %v866_v46 = vpop.permute.xlu0 %865 }
 0x3fe   : > { %v809_v39 = vsel %vm455_vm12, %v804_v60, %v806_v44  ;;  %v810_v37 = vsel %vm455_vm12, %v806_v44, %v808_v40  ;;  %v869_v48 = vsel %vm548_vm11, %v864_v21, %v866_v46  ;;  %v870_v50 = vsel %vm548_vm11, %v866_v46, %v868_v41  ;;  %v1066_v41 = vld [vmem:[%s1817_s7] sm:$0xff] }
 0x3ff   : > { %813 = vst [vmem:[#allocation5 + $0x10] sm:$0xff] %v809_v39  ;;  %814 = vst [vmem:[#allocation5 + $0x18] sm:$0xff] %v810_v37  ;;  %v1269_v51 = vpack.c.bf16 %v810_v37, %v1685_v19  ;;  %v1271_v52 = vpack.c.bf16 %v809_v39, %v1691_v28 }
 0x400   : > { %873 = vst [vmem:[#allocation5 + $0x40] sm:$0xff] %v869_v48  ;;  %874 = vst [vmem:[#allocation5 + $0x48] sm:$0xff] %v870_v50 }
 0x401   : > { %v846_v53 = vpop.permute.xlu1 %845  ;;  %v926_v54 = vpop.permute.xlu0 %925  ;;  %1270 = vmatprep.subr.bf16.mxu0 %v1269_v51 }
 0x402   : > { %v930_v55 = vsel %vm635_vm15, %v926_v54, %v928_v42  ;;  %1272 = vmatpush1.bf16.msra.mxu0 %v1271_v52 }
 0x405   : > { %v885_v56 = vpop.permute.xlu1 %884  ;;  %v906_v58 = vpop.permute.xlu0 %905 }
 0x409   : > { %v829_v59 = vpop.permute.xlu1 %828  ;;  %v827_v61 = vpop.permute.xlu0 %826 }
 0x40a   : > { %v830_v62 = vsel %vm495_vm14, %v825_v43, %v827_v61  ;;  %v831_v1 = vsel %vm495_vm14, %v827_v61, %v829_v59 }
 0x40b   : > { %834 = vst [vmem:[#allocation5 + $0x20] sm:$0xff] %v830_v62  ;;  %835 = vst [vmem:[#allocation5 + $0x28] sm:$0xff] %v831_v1 }
 0x40d   : > { %v850_v2 = vpop.permute.xlu1 %849  ;;  %v848_v3 = vpop.permute.xlu0 %847 }
 0x40e   : > { %v851_v4 = vsel %vm529_vm1, %v846_v53, %v848_v3  ;;  %v852_v5 = vsel %vm529_vm1, %v848_v3, %v850_v2 }
 0x40f   : > { %855 = vst [vmem:[#allocation5 + $0x30] sm:$0xff] %v851_v4  ;;  %856 = vst [vmem:[#allocation5 + $0x38] sm:$0xff] %v852_v5  ;;  %v1273_v6 = vpack.c.bf16 %v852_v5, %v831_v1  ;;  %v1275_v7 = vpack.c.bf16 %v851_v4, %v830_v62 }
 0x411   : > { %v889_v9 = vpop.permute.xlu1 %888  ;;  %v887_v10 = vpop.permute.xlu0 %886  ;;  %1274 = vmatprep.subr.bf16.mxu0 %v1273_v6 }
 0x412   : > { %v890_v14 = vsel %vm582_vm3, %v885_v56, %v887_v10  ;;  %v891_v15 = vsel %vm582_vm3, %v887_v10, %v889_v9  ;;  %1276 = vmatpush1.bf16.msra.mxu0 %v1275_v7 }
 0x413   : > { %v1277_v16 = vpack.c.bf16 %v891_v15, %v870_v50  ;;  %v1279_v17 = vpack.c.bf16 %v890_v14, %v869_v48 }
 0x415   : > { %v910_v20 = vpop.permute.xlu1 %909  ;;  %v908_v24 = vpop.permute.xlu0 %907  ;;  %1278 = vmatprep.subr.bf16.mxu0 %v1277_v16 }
 0x416   : > { %v911_v26 = vsel %vm613_vm13, %v906_v58, %v908_v24  ;;  %v912_v27 = vsel %vm613_vm13, %v908_v24, %v910_v20  ;;  %1280 = vmatpush1.bf16.msra.mxu0 %v1279_v17 }
 0x417   : > { %v1281_v19 = vpack.c.bf16 %v930_v55, %v912_v27 }
 0x419   : > { %v924_v22 = vpop.permute.xlu1 %923  ;;  %v947_v28 = vpop.permute.xlu0 %946  ;;  %1282 = vmatprep.subr.bf16.mxu0 %v1281_v19 }
 0x41a   : > { %v929_v29 = vsel %vm635_vm15, %v924_v22, %v926_v54 }
 0x41b   : > { %v1283_v23 = vpack.c.bf16 %v929_v29, %v911_v26 }
 0x41d   : > { %v949_v25 = vpop.permute.xlu1 %948  ;;  %v945_v30 = vpop.permute.xlu0 %944  ;;  %1284 = vmatpush1.bf16.msra.mxu0 %v1283_v23 }
 0x41e   : > { %v951_v31 = vsel %vm666_vm4, %v947_v28, %v949_v25  ;;  %v950_v38 = vsel %vm666_vm4, %v945_v30, %v947_v28 }
 0x41f   : > { %1000 = vmatprep.subr.mxu0 %v951_v31 }
 0x421   : > { %1001 = vmatpush1.msra.mxu0 %v950_v38 }
 0x422   : > { %1244 = vmatmul.mubr.msk.f32.vlgmr.msra.gmra.mrb[0].mxu0 %vm980_vm0, %v790_v34 }
 0x42e   : > { %v978_v33 = vpop.permute.xlu1 %977 }
 0x4f5   : > { %v1050_v36 = vpop.f32.mrb[0].mxu0 }
 0x4f6   : > { %v1051_v47 = vadd.f32 %v1050_v36, %v978_v33  ;;  %v1052_v57 = vpop.f32.mrb[1].mxu0 }
 0x4f7   : > { %v1053_v35 = vadd.f32 %v1052_v57, %v978_v33 }
 0x4f8   : > { %v1055_v63 = vmax.f32 %v1051_v47, 0.0 }
 0x4f9   : > { %v1056_v32 = vmax.f32 %v1053_v35, 0.0 }
 0x4fa   : > { %v1059_v45 = vadd.f32 %v1055_v63, %v401_v12 }
 0x4fb   : > { %v1060_v18 = vadd.f32 %v1056_v32, %v402_v13 }
 0x4fd   : > { %v1061_v49 = vadd.f32 %v1060_v18, %v1059_v45 }
 0x4ff   : > { %1062 = vadd.xlane.f32.xlu0 %v1061_v49 }
 0x58c   : > { %v1063_v60 = vpop.xlane.xlu0 %1062 }
 0x58d   : > { %v1065_v21 = vmul.f32 0.00390625, %v1063_v60 }
 0x58f   : > { %1257 = vmatpush3.msra.mxu1 %v1065_v21 }
 0x590   : > { %1259 = vmatmul.mubr.msk.f32.vlgmr.msra.gmra.mrb[4].mxu1 %vm1067_vm7, %v1066_v41 }
 0x663   : > { %v1137_v8 = vpop.f32.mrb[4].mxu1 }
 0x664   : > { %v1246_v12 = vmul.f32 -1.442695, %v1137_v8  ;;  %v1260_v11 = vpop.f32.mrb[5].mxu1 }
 0x666   : > { %1344 = vpow2.f32 %v1246_v12 }
 0x670   : > { %v1345_v13 = vpop.eup %1344 }
 0x671   : > { %v1144_v40 = vadd.f32 1.0, %v1345_v13 }
 0x673   : > { %1346 = vrcp.f32 %v1144_v40 }
 0x67d   : > { %v1347_v42 = vpop.eup %1346 }
 0x67e   : > { %1149 = vperm.xlu1 %1342, %v1347_v42  }
 0x6fd   : > { %v1150_v0 = vpop.permute.xlu1 %1149 }
 0x6fe   : > { %v1152_v43 = vmul.f32 %v1150_v0, %v1059_v45  ;;  %v1153_v44 = vmul.f32 %v1150_v0, %v1060_v18 }
 0x700   : > { %1154 = vst [vmem:[%s298_s17] sm:$0xff] %v1152_v43  ;;  %1155 = vst [vmem:[%s298_s17 + $0x8] sm:$0xff] %v1153_v44 }
 0x701   : > { %1361 = shalt.err (!%p1358_p3)
}
 0x702   : > { %s1362_s25 = scalar_lea.hbm %s1768_s12, 256  ;;  %s1366_s13 = scalar_lea.hbm %s1818_s8, 512 }
 0x703   : > { %p1363_p4 = scmp.ne.s32.totalorder %s1768_s12, %s1362_s25  ;;  %p1367_p9 = scmp.lt.u32.totalorder %s1768_s12, %s1818_s8 }
 0x704   : > { %p1368_p10 = scmp.lt.u32.totalorder %s1366_s13, %s1362_s25  ;;  %p1370_p12 = scmp.lt.u32.totalorder %s1362_s25, %s1768_s12 }
 0x705   : > { %p1364_p7 = pnand %p1363_p4, %p1513_p5 }
 0x706   : > { %p1369_p11 = por %p1368_p10, %p1367_p9 }
 0x707   : > { %p1365_p8 = pneg %p1364_p7 }
 0x708   : > { %p1371_p13 = por %p1370_p12, %p1369_p11 }
 0x70a   : > { %p1372_p0 = pnand %p1371_p13, %p1365_p8 }
 0x70c   : > { %1375 = shalt.err (!%p1372_p0)
}
 0x70d   : > { %1285 = dma.vmem_to_hbm [thread:$0]  (%p1513_p5), %s1770_s18, 256, %s1768_s12, %s1157_s21  }
 0x70e PF: > { %p1291_p1 = scmp.ge.s32.totalorder %s1410_s30, 2  ;;  %s1183_s20 = sand.u32 1, %s1398_s27  }
 0x70f   : > { %s1184_s22 = scalar_lea.sflag [#allocation7], %s1183_s20 }
 0x710   : > { %p1288_p2 = pnand %p1291_p1, %p1517_p6 }
 0x712   : > { %1393 = dma.done.wait (!%p1288_p2), %s1184_s22, 256  }
 0x713   : > { %1395 = vsyncadd (!%p1288_p2), %s1184_s22, 4294967040  ;;  %p18_p3 = scmp.ge.s32.totalorder %s1500_s11, 4   ;;  %s1821_s27 = smov %s1402_s28 }
 0x714   : > { %s1822_s28 = smov %s1406_s29  ;;  %s1823_s29 = smov %s1511_s14 }
 0x715   : > { %s1824_s30 = smov %s1500_s11  ;;  %20 = sbr.rel (!%p18_p3) target bundleno = 3 (0x3), region = 88 }
 0x71c   :  { %1189 = vsyncpa [#allocation7], 1 }
 0x71d   :  { %1191 = vsyncpa [#allocation7 + $0x1], 1 }

</bundles_post_ra>
